<compile_context>
chip_gen: v7x
topology: tpu7x:2x2x1
jax: 0.10.0
libtpu: 0.0.40
codegen_flags: <defaults>
</compile_context>

<pallas_src>
import functools

import jax
import jax.numpy as jnp
from jax.experimental import pallas as pl
from jax.experimental.pallas import tpu as pltpu

_LANE = 128
_SUBLANE = 8


def _round_up(x, m):
    return (x + m - 1) // m * m


def _prediction_kernel(num_layers, x_ref, w_ref, b_ref, wh_ref, bh_ref, out_ref):
    """num_layers (= layer_count+1) Linear+ReLU steps, then one fused head matmul.

    Weights arrive as bf16 (MXU-native); the activation operand is cast to bf16
    per matmul; accumulation / bias-add / ReLU are f32.
    """
    x = x_ref[...]                                        # [bt, D] f32
    # num_layers is a static Python int -> short fixed unrolled loop.
    for l in range(num_layers):
        h = jnp.dot(x.astype(jnp.bfloat16), w_ref[l],
                    preferred_element_type=jnp.float32)   # bf16 MXU, f32 acc
        x = jnp.maximum(h + b_ref[l], 0.0)                # f32 bias + ReLU (VPU)
    head = jnp.dot(x.astype(jnp.bfloat16), wh_ref[...],
                   preferred_element_type=jnp.float32)
    out_ref[...] = (head + bh_ref[...]).astype(out_ref.dtype)


def pack_prediction_params(params, *, layer_count, policy_dim):
    """Stack input+hidden layers (bf16), flatten biases, fuse/pad the two heads."""
    D = params["w_in"].shape[0]
    w_stack = jnp.concatenate([params["w_in"][None], params["w_h"]], axis=0)   # [L+1,D,D]
    b_stack = jnp.concatenate(
        [params["b_in"], params["b_h"].reshape(layer_count, D)], axis=0)       # [L+1,D]

    head_w = jnp.concatenate([params["w_p"], params["w_v"]], axis=1)           # [D, P+1]
    head_b = jnp.concatenate([params["b_p"], params["b_v"]], axis=1)           # [1, P+1]
    hp = _round_up(policy_dim + 1, _LANE)                                      # lane-dense pad
    w_head = jnp.zeros((D, hp), jnp.float32).at[:, : policy_dim + 1].set(head_w)
    b_head = jnp.zeros((1, hp), jnp.float32).at[:, : policy_dim + 1].set(head_b)

    return {
        "w_stack": w_stack.astype(jnp.bfloat16),   # bf16: MXU-native, half the DMA/VMEM
        "b_stack": b_stack.astype(jnp.float32),    # biases stay f32 (added post-matmul)
        "w_head": w_head.astype(jnp.bfloat16),
        "b_head": b_head,
    }


@functools.partial(jax.jit, static_argnames=("layer_count", "policy_dim"))
def prediction_forward(packed, s_k, *, layer_count, policy_dim):
    """packed: output of pack_prediction_params.  s_k: [B, D] float32."""
    B, D = s_k.shape
    lp1 = layer_count + 1
    hp = packed["w_head"].shape[1]

    # Batch tiling: pad B to the 8-sublane granule.  Small batches run as one
    # grid step; once B >= 256 we use >=2 steps (v7x's second TensorCore gets
    # work) with a tile capped at 256 rows so the activation/output pipeline
    # keeps running and no single huge double-buffered block blows VMEM.
    Bp = _round_up(B, _SUBLANE)
    if Bp < 256:
        bt = Bp
    else:
        bt = min(256, _round_up(Bp // 2, _SUBLANE))
        Bp = _round_up(Bp, bt)
    grid = (Bp // bt,)

    x = s_k
    if Bp != B:
        x = jnp.zeros((Bp, D), s_k.dtype).at[:B].set(s_k)

    # Explicit VMEM budget: constant operands single-buffered (pl.Buffered(1)),
    # activation input / output slab double-buffered, plus headroom for
    # compiler-internal scratch.  Clamp to v7x's 64 MiB physical VMEM.
    footprint = (
        lp1 * D * D * 2          # bf16 layer-weight stack (resident, 1 buffer)
        + lp1 * D * 4            # f32 bias stack
        + D * hp * 2             # bf16 fused head weight
        + _SUBLANE * hp * 4      # f32 head bias (sublane-padded)
        + 2 * bt * D * 4         # input activations, double-buffered
        + 2 * bt * hp * 4        # output slab, double-buffered
    )
    vmem_limit = min(int(footprint * 1.5) + (4 << 20), 64 << 20)
    # TODO(synk): for D large enough that (L+1)*D^2 bf16 no longer fits VMEM,
    # move the layer loop onto an "arbitrary" grid axis with a carried scratch.

    const = pl.Buffered(1)   # fetched once -> no double buffer for these operands
    kernel = functools.partial(_prediction_kernel, lp1)
    out = pl.pallas_call(
        kernel,
        out_shape=jax.ShapeDtypeStruct((Bp, hp), jnp.float32),
        grid=grid,
        in_specs=[
            pl.BlockSpec((bt, D), lambda i: (i, 0)),                            # activations
            pl.BlockSpec((lp1, D, D), lambda i: (0, 0, 0), pipeline_mode=const),  # layer weights
            pl.BlockSpec((lp1, D), lambda i: (0, 0), pipeline_mode=const),        # layer biases
            pl.BlockSpec((D, hp), lambda i: (0, 0), pipeline_mode=const),         # fused head W
            pl.BlockSpec((1, hp), lambda i: (0, 0), pipeline_mode=const),         # fused head b
        ],
        out_specs=pl.BlockSpec((bt, hp), lambda i: (i, 0)),   # lane-dense 128-wide output slab
        compiler_params=pltpu.CompilerParams(
            dimension_semantics=("parallel",),                # v7x: split batch across 2 TCs
            vmem_limit_bytes=vmem_limit,
        ),
    )(x, packed["w_stack"], packed["b_stack"], packed["w_head"], packed["b_head"])

    policy_k = out[:B, :policy_dim]
    value_k = out[:B, policy_dim : policy_dim + 1]
    return policy_k, value_k


def init_prediction_params(key, state_dim, policy_dim=1, value_dim=1, layer_count=4):
    """Deterministic init mimicking nn.Linear default U(-1/sqrt(fan_in), +1/sqrt(fan_in)).
    Weights returned already transposed to [in, out]."""
    del value_dim  # output_layer2 is Linear(hidden, 1) in the reference module (quirk kept)
    D, P, L = state_dim, policy_dim, layer_count
    ks = jax.random.split(key, 8)
    bound = 1.0 / jnp.sqrt(jnp.float32(D))

    def u(k, shape):
        return jax.random.uniform(k, shape, jnp.float32, -bound, bound)

    return {
        "w_in": u(ks[0], (D, D)),
        "b_in": u(ks[1], (1, D)),
        "w_h":  u(ks[2], (L, D, D)),
        "b_h":  u(ks[3], (L, 1, D)),
        "w_p":  u(ks[4], (D, P)),
        "b_p":  u(ks[5], (1, P)),
        "w_v":  u(ks[6], (D, 1)),
        "b_v":  u(ks[7], (1, 1)),
    }


def prediction_reference(params, s_k, *, layer_count, bf16_matmuls=False):
    """Pure-JAX reference of the PyTorch forward.  bf16_matmuls=True emulates the
    kernel's bf16-operand / f32-accumulate MXU path."""

    def mm(a, w):
        if bf16_matmuls:
            return jnp.dot(a.astype(jnp.bfloat16), w.astype(jnp.bfloat16),
                           preferred_element_type=jnp.float32)
        return a @ w

    x = jnp.maximum(mm(s_k, params["w_in"]) + params["b_in"], 0.0)
    for l in range(layer_count):
        x = jnp.maximum(mm(x, params["w_h"][l]) + params["b_h"][l], 0.0)
    pol = mm(x, params["w_p"]) + params["b_p"]
    val = mm(x, params["w_v"]) + params["b_v"]
    return pol, val


if __name__ == "__main__":
    # Small shapes consistent with the module: s_k is [batch, state_dim]
    batch = 8
    state_dim = 32
    policy_dim = 1
    value_dim = 1
    layer_count = 4

    key = jax.random.PRNGKey(0)
    k_params, k_input = jax.random.split(key)

    params = init_prediction_params(
        k_params, state_dim, policy_dim, value_dim, layer_count
    )
    packed = pack_prediction_params(params, layer_count=layer_count, policy_dim=policy_dim)
    s_k = jax.random.normal(k_input, (batch, state_dim), jnp.float32)

    policy_k, value_k = prediction_forward(
        packed, s_k, layer_count=layer_count, policy_dim=policy_dim
    )
    jax.block_until_ready((policy_k, value_k))

    assert policy_k.shape == (batch, policy_dim)
    assert value_k.shape == (batch, 1)

    # Validate: tight vs a bf16-MXU-emulating reference, loose vs pure-f32 reference.
    bp, bv = prediction_reference(params, s_k, layer_count=layer_count, bf16_matmuls=True)
    fp, fv = prediction_reference(params, s_k, layer_count=layer_count, bf16_matmuls=False)
    assert jnp.allclose(policy_k, bp, atol=5e-3, rtol=5e-3)
    assert jnp.allclose(value_k, bv, atol=5e-3, rtol=5e-3)
    assert jnp.allclose(policy_k, fp, atol=5e-2, rtol=5e-2)
    assert jnp.allclose(value_k, fv, atol=5e-2, rtol=5e-2)

    print("KERNEL_OK")
</pallas_src>

<mosaic_0001>
module attributes {stable_mosaic.version = 11 : i64} {
  func.func @_prediction_kernel(%arg0: i32, %arg1: memref<8x32xf32, #tpu.memory_space<vmem>>, %arg2: memref<5x32x32xbf16, #tpu.memory_space<vmem>>, %arg3: memref<5x32xf32, #tpu.memory_space<vmem>>, %arg4: memref<32x128xbf16, #tpu.memory_space<vmem>>, %arg5: memref<1x128xf32, #tpu.memory_space<vmem>>, %arg6: memref<8x128xf32, #tpu.memory_space<vmem>>) attributes {dimension_semantics = [#tpu.dimension_semantics<parallel>], iteration_bounds = array<i64: 1>, scalar_prefetch = 0 : i64, scratch_operands = 0 : i64, tpu.core_type = #tpu.core_type<tc>, window_params = [{transform_indices = @transform_0, window_bounds = array<i64: 8, 32>}, {pipeline_mode = #tpu.pipeline_mode<synchronous>, transform_indices = @transform_1, window_bounds = array<i64: 5, 32, 32>}, {pipeline_mode = #tpu.pipeline_mode<synchronous>, transform_indices = @transform_2, window_bounds = array<i64: 5, 32>}, {pipeline_mode = #tpu.pipeline_mode<synchronous>, transform_indices = @transform_3, window_bounds = array<i64: 32, 128>}, {pipeline_mode = #tpu.pipeline_mode<synchronous>, transform_indices = @transform_4, window_bounds = array<i64: 1, 128>}, {transform_indices = @transform_5, window_bounds = array<i64: 8, 128>}]} {
    %c0 = arith.constant 0 : index
    %c0_0 = arith.constant 0 : index
    %0 = vector.load %arg1[%c0, %c0_0] : memref<8x32xf32, #tpu.memory_space<vmem>>, vector<8x32xf32>
    %1 = arith.truncf %0 : vector<8x32xf32> to vector<8x32xbf16>
    %c0_1 = arith.constant 0 : index
    %c0_2 = arith.constant 0 : index
    %c0_3 = arith.constant 0 : index
    %2 = vector.load %arg2[%c0_1, %c0_2, %c0_3] : memref<5x32x32xbf16, #tpu.memory_space<vmem>>, vector<1x32x32xbf16>
    %3 = vector.shape_cast %2 : vector<1x32x32xbf16> to vector<32x32xbf16>
    %cst = arith.constant dense<0.000000e+00> : vector<8x32xf32>
    %4 = tpu.matmul %1, %3, %cst {dimension_numbers = #tpu.dot_dimension_numbers<[1], [0], [0], [1], [0, 0, 1, 1], [], []>} : vector<8x32xbf16>, vector<32x32xbf16>, vector<8x32xf32> -> vector<8x32xf32>
    %c0_4 = arith.constant 0 : index
    %c0_5 = arith.constant 0 : index
    %5 = vector.load %arg3[%c0_4, %c0_5] : memref<5x32xf32, #tpu.memory_space<vmem>>, vector<1x32xf32>
    %6 = vector.shape_cast %5 : vector<1x32xf32> to vector<32xf32>
    %7 = vector.shape_cast %6 : vector<32xf32> to vector<1x32xf32>
    %8 = vector.broadcast %7 : vector<1x32xf32> to vector<8x32xf32>
    %9 = arith.addf %4, %8 : vector<8x32xf32>
    %cst_6 = arith.constant 0.000000e+00 : f32
    %10 = vector.broadcast %cst_6 : f32 to vector<8x32xf32>
    %11 = arith.maximumf %9, %10 : vector<8x32xf32>
    %12 = arith.truncf %11 : vector<8x32xf32> to vector<8x32xbf16>
    %c1 = arith.constant 1 : index
    %c0_7 = arith.constant 0 : index
    %c0_8 = arith.constant 0 : index
    %13 = vector.load %arg2[%c1, %c0_7, %c0_8] : memref<5x32x32xbf16, #tpu.memory_space<vmem>>, vector<1x32x32xbf16>
    %14 = vector.shape_cast %13 : vector<1x32x32xbf16> to vector<32x32xbf16>
    %cst_9 = arith.constant dense<0.000000e+00> : vector<8x32xf32>
    %15 = tpu.matmul %12, %14, %cst_9 {dimension_numbers = #tpu.dot_dimension_numbers<[1], [0], [0], [1], [0, 0, 1, 1], [], []>} : vector<8x32xbf16>, vector<32x32xbf16>, vector<8x32xf32> -> vector<8x32xf32>
    %c1_10 = arith.constant 1 : index
    %c0_11 = arith.constant 0 : index
    %16 = vector.load %arg3[%c1_10, %c0_11] : memref<5x32xf32, #tpu.memory_space<vmem>>, vector<1x32xf32>
    %17 = vector.shape_cast %16 : vector<1x32xf32> to vector<32xf32>
    %18 = vector.shape_cast %17 : vector<32xf32> to vector<1x32xf32>
    %19 = vector.broadcast %18 : vector<1x32xf32> to vector<8x32xf32>
    %20 = arith.addf %15, %19 : vector<8x32xf32>
    %cst_12 = arith.constant 0.000000e+00 : f32
    %21 = vector.broadcast %cst_12 : f32 to vector<8x32xf32>
    %22 = arith.maximumf %20, %21 : vector<8x32xf32>
    %23 = arith.truncf %22 : vector<8x32xf32> to vector<8x32xbf16>
    %c2 = arith.constant 2 : index
    %c0_13 = arith.constant 0 : index
    %c0_14 = arith.constant 0 : index
    %24 = vector.load %arg2[%c2, %c0_13, %c0_14] : memref<5x32x32xbf16, #tpu.memory_space<vmem>>, vector<1x32x32xbf16>
    %25 = vector.shape_cast %24 : vector<1x32x32xbf16> to vector<32x32xbf16>
    %cst_15 = arith.constant dense<0.000000e+00> : vector<8x32xf32>
    %26 = tpu.matmul %23, %25, %cst_15 {dimension_numbers = #tpu.dot_dimension_numbers<[1], [0], [0], [1], [0, 0, 1, 1], [], []>} : vector<8x32xbf16>, vector<32x32xbf16>, vector<8x32xf32> -> vector<8x32xf32>
    %c2_16 = arith.constant 2 : index
    %c0_17 = arith.constant 0 : index
    %27 = vector.load %arg3[%c2_16, %c0_17] : memref<5x32xf32, #tpu.memory_space<vmem>>, vector<1x32xf32>
    %28 = vector.shape_cast %27 : vector<1x32xf32> to vector<32xf32>
    %29 = vector.shape_cast %28 : vector<32xf32> to vector<1x32xf32>
    %30 = vector.broadcast %29 : vector<1x32xf32> to vector<8x32xf32>
    %31 = arith.addf %26, %30 : vector<8x32xf32>
    %cst_18 = arith.constant 0.000000e+00 : f32
    %32 = vector.broadcast %cst_18 : f32 to vector<8x32xf32>
    %33 = arith.maximumf %31, %32 : vector<8x32xf32>
    %34 = arith.truncf %33 : vector<8x32xf32> to vector<8x32xbf16>
    %c3 = arith.constant 3 : index
    %c0_19 = arith.constant 0 : index
    %c0_20 = arith.constant 0 : index
    %35 = vector.load %arg2[%c3, %c0_19, %c0_20] : memref<5x32x32xbf16, #tpu.memory_space<vmem>>, vector<1x32x32xbf16>
    %36 = vector.shape_cast %35 : vector<1x32x32xbf16> to vector<32x32xbf16>
    %cst_21 = arith.constant dense<0.000000e+00> : vector<8x32xf32>
    %37 = tpu.matmul %34, %36, %cst_21 {dimension_numbers = #tpu.dot_dimension_numbers<[1], [0], [0], [1], [0, 0, 1, 1], [], []>} : vector<8x32xbf16>, vector<32x32xbf16>, vector<8x32xf32> -> vector<8x32xf32>
    %c3_22 = arith.constant 3 : index
    %c0_23 = arith.constant 0 : index
    %38 = vector.load %arg3[%c3_22, %c0_23] : memref<5x32xf32, #tpu.memory_space<vmem>>, vector<1x32xf32>
    %39 = vector.shape_cast %38 : vector<1x32xf32> to vector<32xf32>
    %40 = vector.shape_cast %39 : vector<32xf32> to vector<1x32xf32>
    %41 = vector.broadcast %40 : vector<1x32xf32> to vector<8x32xf32>
    %42 = arith.addf %37, %41 : vector<8x32xf32>
    %cst_24 = arith.constant 0.000000e+00 : f32
    %43 = vector.broadcast %cst_24 : f32 to vector<8x32xf32>
    %44 = arith.maximumf %42, %43 : vector<8x32xf32>
    %45 = arith.truncf %44 : vector<8x32xf32> to vector<8x32xbf16>
    %c4 = arith.constant 4 : index
    %c0_25 = arith.constant 0 : index
    %c0_26 = arith.constant 0 : index
    %46 = vector.load %arg2[%c4, %c0_25, %c0_26] : memref<5x32x32xbf16, #tpu.memory_space<vmem>>, vector<1x32x32xbf16>
    %47 = vector.shape_cast %46 : vector<1x32x32xbf16> to vector<32x32xbf16>
    %cst_27 = arith.constant dense<0.000000e+00> : vector<8x32xf32>
    %48 = tpu.matmul %45, %47, %cst_27 {dimension_numbers = #tpu.dot_dimension_numbers<[1], [0], [0], [1], [0, 0, 1, 1], [], []>} : vector<8x32xbf16>, vector<32x32xbf16>, vector<8x32xf32> -> vector<8x32xf32>
    %c4_28 = arith.constant 4 : index
    %c0_29 = arith.constant 0 : index
    %49 = vector.load %arg3[%c4_28, %c0_29] : memref<5x32xf32, #tpu.memory_space<vmem>>, vector<1x32xf32>
    %50 = vector.shape_cast %49 : vector<1x32xf32> to vector<32xf32>
    %51 = vector.shape_cast %50 : vector<32xf32> to vector<1x32xf32>
    %52 = vector.broadcast %51 : vector<1x32xf32> to vector<8x32xf32>
    %53 = arith.addf %48, %52 : vector<8x32xf32>
    %cst_30 = arith.constant 0.000000e+00 : f32
    %54 = vector.broadcast %cst_30 : f32 to vector<8x32xf32>
    %55 = arith.maximumf %53, %54 : vector<8x32xf32>
    %56 = arith.truncf %55 : vector<8x32xf32> to vector<8x32xbf16>
    %c0_31 = arith.constant 0 : index
    %c0_32 = arith.constant 0 : index
    %57 = vector.load %arg4[%c0_31, %c0_32] : memref<32x128xbf16, #tpu.memory_space<vmem>>, vector<32x128xbf16>
    %cst_33 = arith.constant dense<0.000000e+00> : vector<8x128xf32>
    %58 = tpu.matmul %56, %57, %cst_33 {dimension_numbers = #tpu.dot_dimension_numbers<[1], [0], [0], [1], [0, 0, 1, 1], [], []>} : vector<8x32xbf16>, vector<32x128xbf16>, vector<8x128xf32> -> vector<8x128xf32>
    %c0_34 = arith.constant 0 : index
    %c0_35 = arith.constant 0 : index
    %59 = vector.load %arg5[%c0_34, %c0_35] : memref<1x128xf32, #tpu.memory_space<vmem>>, vector<1x128xf32>
    %60 = vector.broadcast %59 : vector<1x128xf32> to vector<8x128xf32>
    %61 = arith.addf %58, %60 : vector<8x128xf32>
    %c0_36 = arith.constant 0 : index
    %c0_37 = arith.constant 0 : index
    %62 = vector.load %arg6[%c0_36, %c0_37] : memref<8x128xf32, #tpu.memory_space<vmem>>, vector<8x128xf32>
    tpu.vector_store %arg6[%c0_36, %c0_37], %61 {strides = array<i32>} : memref<8x128xf32, #tpu.memory_space<vmem>>, vector<8x128xf32>,
    return
  }
  func.func @transform_0(%arg0: i32) -> (i32, i32) {
    %c0_i32 = arith.constant 0 : i32
    %c0_i32_0 = arith.constant 0 : i32
    return %arg0, %c0_i32 : i32, i32
  }
  func.func @transform_1(%arg0: i32) -> (i32, i32, i32) {
    %c0_i32 = arith.constant 0 : i32
    %c0_i32_0 = arith.constant 0 : i32
    %c0_i32_1 = arith.constant 0 : i32
    %c0_i32_2 = arith.constant 0 : i32
    return %c0_i32, %c0_i32_0, %c0_i32_1 : i32, i32, i32
  }
  func.func @transform_2(%arg0: i32) -> (i32, i32) {
    %c0_i32 = arith.constant 0 : i32
    %c0_i32_0 = arith.constant 0 : i32
    %c0_i32_1 = arith.constant 0 : i32
    return %c0_i32, %c0_i32_0 : i32, i32
  }
  func.func @transform_3(%arg0: i32) -> (i32, i32) {
    %c0_i32 = arith.constant 0 : i32
    %c0_i32_0 = arith.constant 0 : i32
    %c0_i32_1 = arith.constant 0 : i32
    return %c0_i32, %c0_i32_0 : i32, i32
  }
  func.func @transform_4(%arg0: i32) -> (i32, i32) {
    %c0_i32 = arith.constant 0 : i32
    %c0_i32_0 = arith.constant 0 : i32
    %c0_i32_1 = arith.constant 0 : i32
    return %c0_i32, %c0_i32_0 : i32, i32
  }
  func.func @transform_5(%arg0: i32) -> (i32, i32) {
    %c0_i32 = arith.constant 0 : i32
    %c0_i32_0 = arith.constant 0 : i32
    return %arg0, %c0_i32 : i32, i32
  }
}

</mosaic_0001>

<bundles_post_ra>
// kernel: prediction_forward.1
= control target key start
LH: loop header
LB: loop body
LE: loop exit
PB: predicated region body
PF: predicated region fallthrough
CT: control target
= control target key end

     0   :  { %10 = vsyncpa [#allocation3], 0  ;;  %s816_s0 = inlined_call_operand.vmem [shape: f32[8,32], index: 0, kind: input, shape index: {}]   ;;  %s817_s1 = inlined_call_operand.hbm [shape: bf16[5,32,32], index: 1, kind: input, shape index: {}]   ;;  %s818_s2 = inlined_call_operand.hbm [shape: f32[5,32], index: 2, kind: input, shape index: {}]   ;;  %s819_s3 = inlined_call_operand.hbm [shape: bf16[32,128], index: 3, kind: input, shape index: {}]   ;;  %s820_s4 = inlined_call_operand.hbm [shape: f32[1,128], index: 4, kind: input, shape index: {}]   ;;  %s821_s5 = inlined_call_operand.vmem [shape: f32[8,128], index: 5, kind: output, shape index: {}]  }
   0x1   :  { %11 = vsyncpa [#allocation5], 0 }
   0x2   :  { %12 = vsyncpa [#allocation8], 0  ;;  %s687_s18 = smov [#allocation4]   ;;  %s688_s20 = smov [#allocation2]  }
   0x3   :  { %s33_s19 = sshll.u32 %s687_s18, 4  ;;  %s20_s21 = sshll.u32 %s688_s20, 4  ;;  %s34_s19 = int_to_ptr.vmem [resolvable:$true] %s33_s19  ;;  %s725_s21 = int_to_ptr.vmem [resolvable:$true] %s20_s21 }
   0x4   :  { %s593_s24 = scalar_lea.hbm %s818_s2, 128 }
   0x5   :  { %p594_p0 = scmp.ne.s32.totalorder %s818_s2, %s593_s24  ;;  %p597_p1 = scmp.lt.u32.totalorder %s593_s24, %s818_s2 }
   0x7   :  { %p599_p2 = pnand %p597_p1, %p594_p0 }
   0x9   :  { %602 = shalt.err (!%p599_p2)
}
   0xa   :  { %s603_s29 = scalar_lea.vmem %s34_s19, 128  ;;  %p608_p4 = scmp.lt.s32.totalorder %s34_s19, %s34_s19 }
   0xb   :  { %p604_p3 = scmp.ne.s32.totalorder %s34_s19, %s603_s29  ;;  %p609_p5 = scmp.lt.s32.totalorder %s603_s29, %s603_s29 }
   0xd   :  { %p610_p6 = por %p609_p5, %p608_p4 }
   0xf   :  { %p611_p7 = pnand %p610_p6, %p604_p3 }
  0x11   :  { %614 = shalt.err (!%p611_p7)
}
  0x12   :  { %36 = dma.hbm_to_vmem [thread:$0]  %s818_s2, 128, %s34_s19, [#allocation5]  }
  0x13   :  { %s615_s9 = scalar_lea.hbm %s817_s1, 1280 }
  0x14   :  { %p616_p8 = scmp.ne.s32.totalorder %s817_s1, %s615_s9  ;;  %p619_p9 = scmp.lt.u32.totalorder %s615_s9, %s817_s1 }
  0x16   :  { %p621_p10 = pnand %p619_p9, %p616_p8 }
  0x18   :  { %624 = shalt.err (!%p621_p10)
}
  0x19   :  { %s625_s14 = scalar_lea.vmem %s725_s21, 1280  ;;  %p630_p12 = scmp.lt.s32.totalorder %s725_s21, %s725_s21 }
  0x1a   :  { %p626_p11 = scmp.ne.s32.totalorder %s725_s21, %s625_s14  ;;  %p631_p13 = scmp.lt.s32.totalorder %s625_s14, %s625_s14 }
  0x1c   :  { %p632_p0 = por %p631_p13, %p630_p12 }
  0x1e   :  { %p633_p1 = pnand %p632_p0, %p626_p11 }
  0x20   :  { %636 = shalt.err (!%p633_p1)
}
  0x21   :  { %s689_s2 = smov 64   ;;  %s690_s15 = smov 4  }
  0x22   :  { %26 = dma.hbm_to_vmem [thread:$0]  %s817_s1, 1280, %s725_s21, [#allocation3], %s689_s2, %s689_s2, %s690_s15  }
  0x23   :  { %s691_s18 = smov [#allocation6]   ;;  %s692_s20 = smov [#allocation7]  }
  0x24   :  { %s42_s19 = sshll.u32 %s691_s18, 4  ;;  %s55_s22 = sshll.u32 %s692_s20, 4  ;;  %s43_s19 = int_to_ptr.vmem [resolvable:$true] %s42_s19  ;;  %s56_s22 = int_to_ptr.vmem [resolvable:$true] %s55_s22 }
  0x25   :  { %s637_s25 = scalar_lea.hbm %s819_s3, 256 }
  0x26   :  { %p638_p2 = scmp.ne.s32.totalorder %s819_s3, %s637_s25  ;;  %p641_p3 = scmp.lt.u32.totalorder %s637_s25, %s819_s3 }
  0x28   :  { %p643_p4 = pnand %p641_p3, %p638_p2 }
  0x2a   :  { %646 = shalt.err (!%p643_p4)
}
  0x2b   :  { %s647_s1 = scalar_lea.vmem %s43_s19, 256  ;;  %p652_p6 = scmp.lt.s32.totalorder %s43_s19, %s43_s19 }
  0x2c   :  { %p648_p5 = scmp.ne.s32.totalorder %s43_s19, %s647_s1  ;;  %p653_p7 = scmp.lt.s32.totalorder %s647_s1, %s647_s1 }
  0x2e   :  { %p654_p8 = por %p653_p7, %p652_p6 }
  0x30   :  { %p655_p9 = pnand %p654_p8, %p648_p5 }
  0x32   :  { %658 = shalt.err (!%p655_p9)
}
  0x33   :  { %48 = dma.hbm_to_vmem [thread:$0]  %s819_s3, 256, %s43_s19, [#allocation5], %s689_s2, %s689_s2, %s690_s15  }
  0x34   :  { %s659_s8 = scalar_lea.hbm %s820_s4, 16 }
  0x35   :  { %p660_p10 = scmp.ne.s32.totalorder %s820_s4, %s659_s8  ;;  %p663_p11 = scmp.lt.u32.totalorder %s659_s8, %s820_s4 }
  0x37   :  { %p665_p12 = pnand %p663_p11, %p660_p10 }
  0x39   :  { %668 = shalt.err (!%p665_p12)
}
  0x3a   :  { %s669_s13 = scalar_lea.vmem %s56_s22, 16  ;;  %s673_s14 = scalar_lea.vmem %s56_s22, 32 }
  0x3b   :  { %p670_p13 = scmp.ne.s32.totalorder %s56_s22, %s669_s13  ;;  %p674_p0 = scmp.lt.s32.totalorder %s56_s22, %s56_s22 }
  0x3c   :  { %p675_p1 = scmp.lt.s32.totalorder %s673_s14, %s669_s13 }
  0x3e   :  { %p676_p2 = por %p675_p1, %p674_p0 }
  0x40   :  { %p677_p3 = pnand %p676_p2, %p670_p13 }
  0x42   :  { %680 = shalt.err (!%p677_p3)
}
  0x43   :  { %58 = dma.hbm_to_vmem [thread:$0]  %s820_s4, 16, %s56_s22, [#allocation8]  }
  0x44   :  { %681 = dma.done.wait [#allocation3], 1280  }
  0x45   :  { %682 = vsyncadd [#allocation3], 4294966016 }
  0x46   :  { %683 = dma.done.wait [#allocation5], 384  }
  0x47   :  { %684 = vsyncadd [#allocation5], 4294966912 }
  0x48   :  { %685 = dma.done.wait [#allocation8], 16  }
  0x49   :  { %686 = vsyncadd [#allocation8], 4294967280  ;;  %v693_v0 = vmov 0.0   ;;  %vm694_vm0 = vmmov 0   ;;  %v581_v1 = vld [vmem:[#allocation2] sm:$0xff]   ;;  %v582_v2 = vld [vmem:[#allocation2 + $0x8] sm:$0xff]  }
  0x4a   :  { %525 = vmatprep.subr.bf16.mxu0 %v693_v0  ;;  %529 = vmatprep.mubr.msk.bf16.mxu0 %vm694_vm0, %v693_v0  ;;  %v72_v3 = vld [vmem:[%s816_s0] sm:$0xff]  ;;  %vm95_vm1 = vcmask 261120   ;;  %v583_v5 = vld [vmem:[#allocation2 + $0x10] sm:$0xff]   ;;  %v584_v6 = vld [vmem:[#allocation2 + $0x18] sm:$0xff]  }
  0x4b   :  { %533 = vmatprep.subr.bf16.mxu1 %v693_v0  ;;  %537 = vmatprep.mubr.msk.bf16.mxu1 %vm694_vm0, %v693_v0  ;;  %v73_v4 = vpack.c.bf16 %v72_v3, %v72_v3  ;;  %v585_v7 = vld [vmem:[#allocation2 + $0x20] sm:$0xff]   ;;  %v483_v8 = vld [vmem:[#allocation4] ss:$0 sm:$0xff]  ;;  %v586_v16 = vld [vmem:[#allocation2 + $0x28] sm:$0xff]  }
  0x4c   :  { %526 = vmatpush3.bf16.msra.mxu0 %v581_v1  ;;  %534 = vmatpush3.bf16.msra.mxu1 %v583_v5  ;;  %v587_v17 = vld [vmem:[#allocation2 + $0x30] sm:$0xff]   ;;  %v588_v26 = vld [vmem:[#allocation2 + $0x38] sm:$0xff]   ;;  %v589_v27 = vld [vmem:[#allocation2 + $0x40] sm:$0xff]  }
  0x4d   :  { %527 = vmatprep.subr.bf16.mxu0 %v693_v0  ;;  %535 = vmatprep.subr.bf16.mxu1 %v693_v0  ;;  %v487_v18 = vld [vmem:[#allocation4 + $0x1] ss:$0 sm:$0xff]  ;;  %v491_v28 = vld [vmem:[#allocation4 + $0x2] ss:$0 sm:$0xff]  ;;  %v590_v36 = vld [vmem:[#allocation2 + $0x48] sm:$0xff]  }
  0x4e   :  { %v591_v37 = vld [vmem:[#allocation6] sm:$0xff]   ;;  %v495_v38 = vld [vmem:[#allocation4 + $0x3] ss:$0 sm:$0xff]  ;;  %v592_v46 = vld [vmem:[#allocation6 + $0x8] sm:$0xff]  }
  0x4f   :  { %v499_v47 = vld [vmem:[#allocation4 + $0x4] ss:$0 sm:$0xff]  ;;  %v503_v55 = vld [vmem:[#allocation7] ss:$0 sm:$0xff] }
  0x50   :  { %528 = vmatpush3.bf16.msra.mxu0 %v582_v2  ;;  %536 = vmatpush3.bf16.msra.mxu1 %v584_v6 }
  0x51   :  { %541 = vmatprep.subr.bf16.mxu0 %v693_v0  ;;  %549 = vmatprep.subr.bf16.mxu1 %v693_v0 }
  0x53   :  { %530 = vmatmul.mubr.msk.bf16.vlgmr.msra.gmra.mrb[0].mxu0 %vm95_vm1, %v73_v4 }
  0x54   :  { %545 = vmatprep.mubr.msk.bf16.mxu0 %vm694_vm0, %v693_v0  ;;  %542 = vmatpush3.bf16.msra.mxu0 %v585_v7 }
  0x55   :  { %543 = vmatprep.subr.bf16.mxu0 %v693_v0 }
  0x58   :  { %544 = vmatpush3.bf16.msra.mxu0 %v586_v16 }
  0x59   :  { %557 = vmatprep.subr.bf16.mxu0 %v693_v0 }
 0x126   :  { %v133_v9 = vpop.f32.mrb[0].mxu0 }
 0x127   :  { %v134_v10 = vadd.f32 %v483_v8, %v133_v9  ;;  %v531_v11 = vpop.f32.mrb[1].mxu0 }
 0x128   :  { %v136_v12 = vpop.f32.mrb[2].mxu0 }
 0x129   :  { %v139_v13 = vmax.f32 %v134_v10, 0.0  ;;  %v532_v14 = vpop.f32.mrb[3].mxu0 }
 0x12b   :  { %v140_v15 = vpack.c.bf16 %v139_v13, %v139_v13 }
 0x12d   :  { %538 = vmatmul.mubr.msk.bf16.vlgmr.msra.gmra.mrb[0].mxu1 %vm95_vm1, %v140_v15 }
 0x12e   :  { %553 = vmatprep.mubr.msk.bf16.mxu1 %vm694_vm0, %v693_v0  ;;  %550 = vmatpush3.bf16.msra.mxu1 %v587_v17 }
 0x12f   :  { %551 = vmatprep.subr.bf16.mxu1 %v693_v0 }
 0x132   :  { %552 = vmatpush3.bf16.msra.mxu1 %v588_v26 }
 0x133   :  { %565 = vmatprep.subr.bf16.mxu1 %v693_v0 }
 0x200   :  { %v200_v19 = vpop.f32.mrb[0].mxu1 }
 0x201   :  { %v201_v20 = vadd.f32 %v487_v18, %v200_v19  ;;  %v539_v21 = vpop.f32.mrb[1].mxu1 }
 0x202   :  { %v203_v22 = vpop.f32.mrb[2].mxu1 }
 0x203   :  { %v206_v23 = vmax.f32 %v201_v20, 0.0  ;;  %v540_v24 = vpop.f32.mrb[3].mxu1 }
 0x205   :  { %v207_v25 = vpack.c.bf16 %v206_v23, %v206_v23 }
 0x207   :  { %546 = vmatmul.mubr.msk.bf16.vlgmr.msra.gmra.mrb[4].mxu0 %vm95_vm1, %v207_v25 }
 0x208   :  { %561 = vmatprep.mubr.msk.bf16.mxu0 %vm694_vm0, %v693_v0  ;;  %558 = vmatpush3.bf16.msra.mxu0 %v589_v27 }
 0x209   :  { %559 = vmatprep.subr.bf16.mxu0 %v693_v0 }
 0x20c   :  { %560 = vmatpush3.bf16.msra.mxu0 %v590_v36 }
 0x2da   :  { %v267_v29 = vpop.f32.mrb[4].mxu0 }
 0x2db   :  { %v268_v30 = vadd.f32 %v491_v28, %v267_v29  ;;  %v547_v31 = vpop.f32.mrb[5].mxu0 }
 0x2dc   :  { %v270_v32 = vpop.f32.mrb[6].mxu0 }
 0x2dd   :  { %v273_v33 = vmax.f32 %v268_v30, 0.0  ;;  %v548_v34 = vpop.f32.mrb[7].mxu0 }
 0x2df   :  { %v274_v35 = vpack.c.bf16 %v273_v33, %v273_v33 }
 0x2e1   :  { %554 = vmatmul.mubr.msk.bf16.vlgmr.msra.gmra.mrb[4].mxu1 %vm95_vm1, %v274_v35 }
 0x2e2   :  { %569 = vmatprep.mubr.msk.bf16.mxu1 %vm694_vm0, %v693_v0  ;;  %566 = vmatpush3.bf16.msra.mxu1 %v591_v37 }
 0x2e3   :  { %567 = vmatprep.subr.bf16.mxu1 %v693_v0 }
 0x2e6   :  { %568 = vmatpush3.bf16.msra.mxu1 %v592_v46 }
 0x3b4   :  { %v334_v39 = vpop.f32.mrb[4].mxu1 }
 0x3b5   :  { %v335_v40 = vadd.f32 %v495_v38, %v334_v39  ;;  %v555_v41 = vpop.f32.mrb[5].mxu1 }
 0x3b6   :  { %v337_v42 = vpop.f32.mrb[6].mxu1 }
 0x3b7   :  { %v340_v43 = vmax.f32 %v335_v40, 0.0  ;;  %v556_v44 = vpop.f32.mrb[7].mxu1 }
 0x3b9   :  { %v341_v45 = vpack.c.bf16 %v340_v43, %v340_v43 }
 0x3bb   :  { %562 = vmatmul.mubr.msk.bf16.vlgmr.msra.gmra.mrb[8].mxu0 %vm95_vm1, %v341_v45 }
 0x48e   :  { %v401_v48 = vpop.f32.mrb[8].mxu0 }
 0x48f   :  { %v402_v49 = vadd.f32 %v499_v47, %v401_v48  ;;  %v563_v50 = vpop.f32.mrb[9].mxu0 }
 0x490   :  { %v404_v51 = vpop.f32.mrb[10].mxu0 }
 0x491   :  { %v407_v52 = vmax.f32 %v402_v49, 0.0  ;;  %v564_v53 = vpop.f32.mrb[11].mxu0 }
 0x493   :  { %v408_v54 = vpack.c.bf16 %v407_v52, %v407_v52 }
 0x495   :  { %570 = vmatmul.mubr.msk.bf16.vlgmr.msra.gmra.mrb[8].mxu1 %vm95_vm1, %v408_v54 }
 0x568   :  { %v469_v56 = vpop.f32.mrb[8].mxu1 }
 0x569   :  { %v470_v57 = vadd.f32 %v503_v55, %v469_v56  ;;  %v571_v58 = vpop.f32.mrb[9].mxu1 }
 0x56a   :  { %v472_v59 = vpop.f32.mrb[10].mxu1 }
 0x56b   :  { %475 = vst [vmem:[%s821_s5] sm:$0xff] %v470_v57  ;;  %v572_v60 = vpop.f32.mrb[11].mxu1 }
 0x56c   :  { %480 = vsyncpa [#allocation3], 1 }
 0x56d   :  { %481 = vsyncpa [#allocation5], 1 }
 0x56e   :  { %482 = vsyncpa [#allocation8], 1 }

</bundles_post_ra>
